<compile_context>
chip_gen: v7x
topology: tpu7x:2x2x1
jax: 0.10.0
libtpu: 0.0.40
codegen_flags: <defaults>
</compile_context>

<pallas_src>
import functools

import jax
import jax.numpy as jnp
from jax.experimental import pallas as pl
from jax.experimental.pallas import tpu as pltpu

WIDTH_MULT_LIST = [0.25, 0.5, 0.75, 1.0]
EPS = 1e-5

_MIB = 1024 * 1024


def _device_profile():
    """(n_splits, working_budget_bytes, vmem_limit_bytes) for the local TPU."""
    try:
        kind = jax.devices()[0].device_kind.lower()
    except Exception:  # pragma: no cover - defensive
        kind = ""
    if "v7" in kind:                                   # 2 TC/chip, 64 MiB VMEM/TC
        return 2, 24 * _MIB, 48 * _MIB
    if "v6" in kind or "v5" in kind or "v4" in kind:   # 128 MiB VMEM, 1 TC visible
        return 1, 56 * _MIB, 96 * _MIB
    return 1, 16 * _MIB, 32 * _MIB                     # unknown chip: conservative


def _pick_tiling(n, c, hw, max_elems):
    """Choose (bn, tile_hw): bn | n, tile_hw | hw, bn*c*tile_hw <= max_elems."""
    per_image = c * hw
    if per_image <= max_elems:
        bn = max(1, min(n, max_elems // per_image))
        while n % bn:
            bn -= 1
        return bn, hw
    if hw % 128 != 0:
        # TODO(synk): very large C with H*W not a multiple of 128 would need a
        # padded / masked-store path; typical BN shapes do not hit this.
        return 1, hw
    t = min(hw, max(128, (max_elems // c) // 128 * 128))
    while hw % t:
        t -= 128
    return 1, t


def _pick_acc_lanes(tile_hw, c):
    """Accumulator lane width: divides tile_hw, keeps 2 f32 scratch bufs small."""
    if tile_hw % 128 != 0:
        return tile_hw
    for cand in (1024, 512, 256, 128):
        if tile_hw % cand == 0 and 8 * c * cand <= 2 * _MIB:
            return cand
    return 128


# ---------------------------------------------------------------------------
# Pass 1: per-channel partial sum / sum-of-squares.
# Grid = (n_splits, steps_per_split); the split axis is "parallel" (megacore on
# v7x), the inner axis walks (batch-block, hw-tile) pairs.  Accumulation is
# done into wide (C, acc_lanes) VMEM accumulators with lane-aligned chunk loads
# (VPU adds only); the single cross-lane reduce happens in the finalize.
# ---------------------------------------------------------------------------
def _stats_kernel(x_ref, part_ref, sum_ref, sq_ref, *,
                  steps_per_split, total_steps, chunks, acc_lanes, has_tail):
    s = pl.program_id(0)
    t = pl.program_id(1)

    @pl.when(t == 0)
    def _init():
        sum_ref[...] = jnp.zeros_like(sum_ref)
        sq_ref[...] = jnp.zeros_like(sq_ref)

    def _chunk(k):
        off = pl.multiple_of(k * acc_lanes, acc_lanes)
        xc = x_ref[:, :, pl.ds(off, acc_lanes)].astype(jnp.float32)  # (bn,C,L)
        sum_ref[...] += jnp.sum(xc, axis=0)            # VPU adds, no lane reduce
        sq_ref[...] += jnp.sum(xc * xc, axis=0)

    def _accumulate():
        if chunks == 1:
            _chunk(0)
        else:
            def _body(k, carry):
                _chunk(k)
                return carry
            jax.lax.fori_loop(0, chunks, _body, 0, unroll=chunks <= 8)

    if has_tail:
        flat = s * steps_per_split + t
        pl.when(flat < total_steps)(_accumulate)       # predicate dummy tail step
    else:
        _accumulate()

    @pl.when(t == steps_per_split - 1)
    def _finalize():                                   # one XLU reduce per split
        part_ref[0, :, :] = jnp.sum(sum_ref[...], axis=1, keepdims=True)
        part_ref[1, :, :] = jnp.sum(sq_ref[...], axis=1, keepdims=True)


# ---------------------------------------------------------------------------
# Pass 2: fold the partial sums (tiny, per step) and apply y = x*scale + shift
# over lane-dense (bn, C, tile_hw) blocks.  Folding the finalize in here
# removes the intervening XLA dispatch between the two pallas_calls.
# ---------------------------------------------------------------------------
def _norm_kernel(x_ref, part_ref, gb_ref, o_ref, *, inv_m, eps):
    stats = jnp.sum(part_ref[...], axis=0)                    # (2, C, 1)
    mean = stats[0] * inv_m                                   # (C, 1)
    var = jnp.maximum(stats[1] * inv_m - mean * mean, 0.0)    # biased, clamped
    scale = gb_ref[0] * jax.lax.rsqrt(var + eps)              # (C, 1)
    shift = gb_ref[1] - mean * scale                          # (C, 1)
    x = x_ref[...].astype(jnp.float32)                        # (bn, C, tile_hw)
    o_ref[...] = (x * scale + shift).astype(o_ref.dtype)


# ---------------------------------------------------------------------------
# Fused single-pass path: whole activation resident in VMEM.
# ---------------------------------------------------------------------------
def _fused_kernel(x_ref, gb_ref, o_ref, *, inv_m, eps):
    x = x_ref[...].astype(jnp.float32)                        # (N, C, HW)
    xs = jnp.sum(x, axis=0)                                   # (C, HW)  VPU
    xsq = jnp.sum(x * x, axis=0)                              # (C, HW)  VPU
    s = jnp.sum(xs, axis=1, keepdims=True)                    # (C, 1)   one reduce
    sq = jnp.sum(xsq, axis=1, keepdims=True)                  # (C, 1)
    mean = s * inv_m
    var = jnp.maximum(sq * inv_m - mean * mean, 0.0)
    scale = gb_ref[0] * jax.lax.rsqrt(var + eps)
    shift = gb_ref[1] - mean * scale
    o_ref[...] = (x * scale + shift).astype(o_ref.dtype)


def batchnorm2d_pallas(x_nchw, gamma, beta, *, eps=EPS,
                       force_two_pass=False, max_block_elems=None):
    """Training-mode BatchNorm2d on NCHW input via Pallas TPU kernels."""
    n, c, h, w = x_nchw.shape
    assert gamma.shape == (c,) and beta.shape == (c,)

    hw = h * w
    m_total = n * hw
    inv_m = 1.0 / float(m_total)
    x3d = x_nchw.reshape(n, c, hw)       # free reshape of NCHW (no transpose)
    itemsize = jnp.dtype(x_nchw.dtype).itemsize

    n_splits, working_budget, vmem_limit = _device_profile()

    # dtype-aware budgets: 2x in + 2x out (double-buffered) + f32 temporaries.
    max_elems = max(working_budget // (4 * itemsize + 8), 1024)
    if max_block_elems is not None:
        max_elems = max_block_elems
    fused_elems = max(working_budget // (4 * itemsize + 16), 1024)

    gb = jnp.stack([gamma.astype(jnp.float32).reshape(c, 1),
                    beta.astype(jnp.float32).reshape(c, 1)], axis=0)   # (2, C, 1)

    # ---- fused single-pass path: 1 HBM read + 1 write -----------------------
    if not force_two_pass and n * c * hw <= fused_elems:
        y3d = pl.pallas_call(
            functools.partial(_fused_kernel, inv_m=inv_m, eps=eps),
            out_shape=jax.ShapeDtypeStruct((n, c, hw), x_nchw.dtype),
            grid=(1,),
            in_specs=[pl.BlockSpec((n, c, hw), lambda i: (0, 0, 0)),
                      pl.BlockSpec((2, c, 1), lambda i: (0, 0, 0))],
            out_specs=pl.BlockSpec((n, c, hw), lambda i: (0, 0, 0)),
            compiler_params=pltpu.CompilerParams(vmem_limit_bytes=vmem_limit),
        )(x3d, gb)
        return y3d.reshape(n, c, h, w)

    # ---- two-pass path -------------------------------------------------------
    bn, tile_hw = _pick_tiling(n, c, hw, max_elems)
    grid_n = n // bn
    grid_hw = hw // tile_hw
    total_steps = grid_n * grid_hw

    n_splits = min(n_splits, total_steps)
    steps_per_split = pl.cdiv(total_steps, n_splits)
    has_tail = n_splits * steps_per_split != total_steps
    acc_lanes = _pick_acc_lanes(tile_hw, c)
    chunks = tile_hw // acc_lanes

    def _x_index_p1(s, t):
        flat = jnp.minimum(s * steps_per_split + t, total_steps - 1)
        return (flat // grid_hw, 0, flat % grid_hw)

    partials = pl.pallas_call(
        functools.partial(_stats_kernel,
                          steps_per_split=steps_per_split,
                          total_steps=total_steps,
                          chunks=chunks,
                          acc_lanes=acc_lanes,
                          has_tail=has_tail),
        out_shape=jax.ShapeDtypeStruct((n_splits, 2, c, 1), jnp.float32),
        grid=(n_splits, steps_per_split),
        in_specs=[pl.BlockSpec((bn, c, tile_hw), _x_index_p1)],
        out_specs=pl.BlockSpec((None, 2, c, 1), lambda s, t: (s, 0, 0, 0)),
        scratch_shapes=[pltpu.VMEM((c, acc_lanes), jnp.float32),
                        pltpu.VMEM((c, acc_lanes), jnp.float32)],
        compiler_params=pltpu.CompilerParams(
            dimension_semantics=("parallel", "arbitrary"),
            vmem_limit_bytes=vmem_limit),
    )(x3d)

    y3d = pl.pallas_call(
        functools.partial(_norm_kernel, inv_m=inv_m, eps=eps),
        out_shape=jax.ShapeDtypeStruct((n, c, hw), x_nchw.dtype),
        grid=(grid_n, grid_hw),
        in_specs=[pl.BlockSpec((bn, c, tile_hw), lambda i, j: (i, 0, j)),
                  pl.BlockSpec((n_splits, 2, c, 1), lambda i, j: (0, 0, 0, 0)),
                  pl.BlockSpec((2, c, 1), lambda i, j: (0, 0, 0))],
        out_specs=pl.BlockSpec((bn, c, tile_hw), lambda i, j: (i, 0, j)),
        compiler_params=pltpu.CompilerParams(
            dimension_semantics=("parallel", "parallel"),
            vmem_limit_bytes=vmem_limit),
    )(x3d, partials, gb)

    return y3d.reshape(n, c, h, w)


class SwitchableBatchNorm2dPallas:
    """JAX/Pallas port of SwitchableBatchNorm2d (forward only, training mode)."""

    def __init__(self, num_features_list):
        self.num_features_list = num_features_list
        self.num_features = max(num_features_list)
        # Deterministic nn.BatchNorm2d init: weight = 1, bias = 0, per width.
        self.gammas = [jnp.ones((nf,), jnp.float32) for nf in num_features_list]
        self.betas = [jnp.zeros((nf,), jnp.float32) for nf in num_features_list]
        self.width_mult = max(WIDTH_MULT_LIST)
        self.ignore_model_profiling = True

    def __call__(self, x_nchw):
        idx = WIDTH_MULT_LIST.index(self.width_mult)
        return batchnorm2d_pallas(x_nchw, self.gammas[idx], self.betas[idx])


def _reference_batchnorm(x_nchw, gamma, beta, eps=EPS):
    mean = jnp.mean(x_nchw, axis=(0, 2, 3), keepdims=True)
    var = jnp.mean((x_nchw - mean) ** 2, axis=(0, 2, 3), keepdims=True)  # biased
    g = gamma.reshape(1, -1, 1, 1)
    b = beta.reshape(1, -1, 1, 1)
    return (x_nchw - mean) * jax.lax.rsqrt(var + eps) * g + b


if __name__ == "__main__":
    key = jax.random.PRNGKey(0)
    N, C, H, W = 2, 4, 16, 16                     # small NCHW input
    x = jax.random.normal(key, (N, C, H, W), dtype=jnp.float32) * 2.0 + 0.5

    # num_features_list such that the selected (widest) BN matches C channels.
    module = SwitchableBatchNorm2dPallas(num_features_list=[1, 2, 3, C])
    idx = WIDTH_MULT_LIST.index(module.width_mult)
    gamma, beta = module.gammas[idx], module.betas[idx]
    y_ref = _reference_batchnorm(x, gamma, beta)

    # 1) Default dispatch (fused single-pass path at this size).
    y = jax.block_until_ready(module(x))
    assert y.shape == x.shape and y.dtype == x.dtype
    assert jnp.max(jnp.abs(y - y_ref)) < 1e-4, "fused path mismatch"

    # 2) Two-pass path (single step per split, batch-blocked).
    y2 = jax.block_until_ready(
        batchnorm2d_pallas(x, gamma, beta, force_two_pass=True))
    assert jnp.max(jnp.abs(y2 - y_ref)) < 1e-4, "two-pass path mismatch"

    # 3) Two-pass path with hw tiling + multi-step accumulation (small tiles).
    y3 = jax.block_until_ready(
        batchnorm2d_pallas(x, gamma, beta, force_two_pass=True,
                           max_block_elems=C * 128))
    assert jnp.max(jnp.abs(y3 - y_ref)) < 1e-4, "tiled two-pass path mismatch"

    print("KERNEL_OK")
</pallas_src>

<mosaic_0001>
module attributes {stable_mosaic.version = 11 : i64} {
  func.func @_fused_kernel(%arg0: i32, %arg1: memref<2x4x256xf32, #tpu.memory_space<vmem>>, %arg2: memref<2x4x1xf32, #tpu.memory_space<vmem>>, %arg3: memref<2x4x256xf32, #tpu.memory_space<vmem>>) attributes {dimension_semantics = [#tpu.dimension_semantics<arbitrary>], iteration_bounds = array<i64: 1>, scalar_prefetch = 0 : i64, scratch_operands = 0 : i64, tpu.core_type = #tpu.core_type<tc>, window_params = [{pipeline_mode = #tpu.pipeline_mode<synchronous>, transform_indices = @transform_0, window_bounds = array<i64: 2, 4, 256>}, {pipeline_mode = #tpu.pipeline_mode<synchronous>, transform_indices = @transform_1, window_bounds = array<i64: 2, 4, 1>}, {pipeline_mode = #tpu.pipeline_mode<synchronous>, transform_indices = @transform_2, window_bounds = array<i64: 2, 4, 256>}]} {
    %c0 = arith.constant 0 : index
    %c0_0 = arith.constant 0 : index
    %c0_1 = arith.constant 0 : index
    %0 = vector.load %arg1[%c0, %c0_0, %c0_1] : memref<2x4x256xf32, #tpu.memory_space<vmem>>, vector<2x4x256xf32>
    %cst = arith.constant dense<0.000000e+00> : vector<4x256xf32>
    %1 = vector.multi_reduction <add>, %0, %cst [0] : vector<2x4x256xf32> to vector<4x256xf32>
    %2 = arith.mulf %0, %0 : vector<2x4x256xf32>
    %cst_2 = arith.constant dense<0.000000e+00> : vector<4x256xf32>
    %3 = vector.multi_reduction <add>, %2, %cst_2 [0] : vector<2x4x256xf32> to vector<4x256xf32>
    %cst_3 = arith.constant dense<0.000000e+00> : vector<4xf32>
    %4 = vector.multi_reduction <add>, %1, %cst_3 [1] : vector<4x256xf32> to vector<4xf32>
    %5 = vector.shape_cast %4 : vector<4xf32> to vector<4x1xf32>
    %cst_4 = arith.constant dense<0.000000e+00> : vector<4xf32>
    %6 = vector.multi_reduction <add>, %3, %cst_4 [1] : vector<4x256xf32> to vector<4xf32>
    %7 = vector.shape_cast %6 : vector<4xf32> to vector<4x1xf32>
    %cst_5 = arith.constant 0.001953125 : f32
    %8 = vector.broadcast %cst_5 : f32 to vector<4x1xf32>
    %9 = arith.mulf %5, %8 : vector<4x1xf32>
    %cst_6 = arith.constant 0.001953125 : f32
    %10 = vector.broadcast %cst_6 : f32 to vector<4x1xf32>
    %11 = arith.mulf %7, %10 : vector<4x1xf32>
    %12 = arith.mulf %9, %9 : vector<4x1xf32>
    %13 = arith.subf %11, %12 : vector<4x1xf32>
    %cst_7 = arith.constant 0.000000e+00 : f32
    %14 = vector.broadcast %cst_7 : f32 to vector<4x1xf32>
    %15 = arith.maximumf %13, %14 : vector<4x1xf32>
    %c0_8 = arith.constant 0 : index
    %c0_9 = arith.constant 0 : index
    %c0_10 = arith.constant 0 : index
    %16 = vector.load %arg2[%c0_8, %c0_9, %c0_10] : memref<2x4x1xf32, #tpu.memory_space<vmem>>, vector<1x4x1xf32>
    %17 = vector.shape_cast %16 : vector<1x4x1xf32> to vector<4x1xf32>
    %cst_11 = arith.constant 9.99999974E-6 : f32
    %18 = vector.broadcast %cst_11 : f32 to vector<4x1xf32>
    %19 = arith.addf %15, %18 : vector<4x1xf32>
    %20 = math.rsqrt %19 : vector<4x1xf32>
    %21 = arith.mulf %17, %20 : vector<4x1xf32>
    %c1 = arith.constant 1 : index
    %c0_12 = arith.constant 0 : index
    %c0_13 = arith.constant 0 : index
    %22 = vector.load %arg2[%c1, %c0_12, %c0_13] : memref<2x4x1xf32, #tpu.memory_space<vmem>>, vector<1x4x1xf32>
    %23 = vector.shape_cast %22 : vector<1x4x1xf32> to vector<4x1xf32>
    %24 = arith.mulf %9, %21 : vector<4x1xf32>
    %25 = arith.subf %23, %24 : vector<4x1xf32>
    %26 = vector.shape_cast %21 : vector<4x1xf32> to vector<1x4x1xf32>
    %27 = vector.broadcast %26 : vector<1x4x1xf32> to vector<2x4x256xf32>
    %28 = arith.mulf %0, %27 : vector<2x4x256xf32>
    %29 = vector.shape_cast %25 : vector<4x1xf32> to vector<1x4x1xf32>
    %30 = vector.broadcast %29 : vector<1x4x1xf32> to vector<2x4x256xf32>
    %31 = arith.addf %28, %30 : vector<2x4x256xf32>
    %c0_14 = arith.constant 0 : index
    %c0_15 = arith.constant 0 : index
    %c0_16 = arith.constant 0 : index
    %32 = vector.load %arg3[%c0_14, %c0_15, %c0_16] : memref<2x4x256xf32, #tpu.memory_space<vmem>>, vector<2x4x256xf32>
    tpu.vector_store %arg3[%c0_14, %c0_15, %c0_16], %31 {strides = array<i32>} : memref<2x4x256xf32, #tpu.memory_space<vmem>>, vector<2x4x256xf32>,
    return
  }
  func.func @transform_0(%arg0: i32) -> (i32, i32, i32) {
    %c0_i32 = arith.constant 0 : i32
    %c0_i32_0 = arith.constant 0 : i32
    %c0_i32_1 = arith.constant 0 : i32
    %c0_i32_2 = arith.constant 0 : i32
    return %c0_i32, %c0_i32_0, %c0_i32_1 : i32, i32, i32
  }
  func.func @transform_1(%arg0: i32) -> (i32, i32, i32) {
    %c0_i32 = arith.constant 0 : i32
    %c0_i32_0 = arith.constant 0 : i32
    %c0_i32_1 = arith.constant 0 : i32
    %c0_i32_2 = arith.constant 0 : i32
    return %c0_i32, %c0_i32_0, %c0_i32_1 : i32, i32, i32
  }
  func.func @transform_2(%arg0: i32) -> (i32, i32, i32) {
    %c0_i32 = arith.constant 0 : i32
    %c0_i32_0 = arith.constant 0 : i32
    %c0_i32_1 = arith.constant 0 : i32
    %c0_i32_2 = arith.constant 0 : i32
    return %c0_i32, %c0_i32_0, %c0_i32_1 : i32, i32, i32
  }
}

</mosaic_0001>

<bundles_post_ra>
// kernel: tpu_custom_call.1
= control target key start
LH: loop header
LB: loop body
LE: loop exit
PB: predicated region body
PF: predicated region fallthrough
CT: control target
= control target key end

     0   :  { %7 = vsyncpa [#allocation3], 0  ;;  %s255_s0 = inlined_call_operand.hbm [shape: f32[2,4,256], index: 0, kind: input, shape index: {}]   ;;  %s256_s1 = inlined_call_operand.vmem [shape: f32[2,4,1], index: 1, kind: input, shape index: {}]   ;;  %s257_s2 = inlined_call_operand.hbm [shape: f32[2,4,256], index: 2, kind: output, shape index: {}]  }
   0x1   :  { %8 = vsyncpa [#allocation4], 0  ;;  %s186_s9 = smov [#allocation2]   ;;  %s138_s13 = scalar_lea.hbm %s255_s0, 256 }
   0x2   :  { %s14_s10 = sshll.u32 %s186_s9, 4  ;;  %p139_p0 = scmp.ne.s32.totalorder %s255_s0, %s138_s13  ;;  %s15_s10 = int_to_ptr.vmem [resolvable:$true] %s14_s10 }
   0x3   :  { %p142_p1 = scmp.lt.u32.totalorder %s138_s13, %s255_s0 }
   0x5   :  { %p144_p2 = pnand %p142_p1, %p139_p0 }
   0x7   :  { %147 = shalt.err (!%p144_p2)
}
   0x8   :  { %s148_s18 = scalar_lea.vmem %s15_s10, 256  ;;  %p153_p4 = scmp.lt.s32.totalorder %s15_s10, %s15_s10 }
   0x9   :  { %p149_p3 = scmp.ne.s32.totalorder %s15_s10, %s148_s18  ;;  %p154_p5 = scmp.lt.s32.totalorder %s148_s18, %s148_s18 }
   0xb   :  { %p155_p6 = por %p154_p5, %p153_p4 }
   0xd   :  { %p156_p7 = pnand %p155_p6, %p149_p3 }
   0xf   :  { %159 = shalt.err (!%p156_p7)
}
  0x10   :  { %s187_s19 = smov 128   ;;  %s188_s20 = smov 8  }
  0x11   :  { %20 = dma.hbm_to_vmem [thread:$0]  %s255_s0, 256, %s15_s10, [#allocation3], %s187_s19, %s187_s19, %s188_s20  }
  0x12   :  { %182 = dma.done.wait [#allocation3], 256  }
  0x13   :  { %183 = vsyncadd [#allocation3], 4294967040  ;;  %vm34_vm0 = vcmask 1043456   ;;  %v26_v0 = vld [vmem:[#allocation2] sm:$0xff]  ;;  %v27_v1 = vld [vmem:[#allocation2 + $0x8] sm:$0xff]  ;;  %v189_v26 = vmov 0   ;;  %v85_v43 = vlaneseq }
  0x14   :  { %v30_v2 = vcombine.high %v26_v0, %v26_v0  ;;  %v31_v3 = vcombine.high %v27_v1, %v27_v1  ;;  %v35_v4 = vsel %vm34_vm0, %v26_v0, 0.0  ;;  %v36_v5 = vsel %vm34_vm0, %v27_v1, 0.0  ;;  %132 = vset.pattern.permute.xlu1 %v189_v26  ;;  %133 = vset.pattern.permute.xlu0 %v189_v26  ;;  %v70_v35 = vld [vmem:[%s256_s1] sm:$0xf]  ;;  %v125_v38 = vld [vmem:[%s256_s1 + $0x4] sm:$0xf] }
  0x15   :  { %v37_v6 = vadd.f32 %v36_v5, %v35_v4  ;;  %v41_v7 = vmul.f32 %v26_v0, %v26_v0  ;;  %v42_v8 = vmul.f32 %v27_v1, %v27_v1  ;;  %v190_v41 = vmov 839922192   ;;  %s191_s26 = smov [#allocation5]  }
  0x16   :  { %v38_v9 = vsel %vm34_vm0, %v30_v2, 0.0  ;;  %v39_v10 = vsel %vm34_vm0, %v31_v3, 0.0  ;;  %v83_v42 = vunpack.c.l.s4 %v190_v41  ;;  %v86_v45 = vshrl.u32 %v85_v43, 7  ;;  %s113_s27 = sshll.u32 %s191_s26, 4  ;;  %s114_s27 = int_to_ptr.vmem [resolvable:$true] %s113_s27 }
  0x17   :  { %v40_v11 = vadd.f32 %v39_v10, %v38_v9  ;;  %v55_v12 = vsel %vm34_vm0, %v37_v6, 0.0  ;;  %v45_v13 = vcombine.high %v41_v7, %v41_v7  ;;  %v46_v14 = vcombine.high %v42_v8, %v42_v8  ;;  %s160_s1 = scalar_lea.vmem %s114_s27, 256  ;;  %p165_p9 = scmp.lt.s32.totalorder %s114_s27, %s114_s27 }
  0x18   :  { %v49_v15 = vsel %vm34_vm0, %v41_v7, 0.0  ;;  %v50_v16 = vsel %vm34_vm0, %v42_v8, 0.0  ;;  %v84_v44 = vunpack.c.0.s8 %v83_v42  ;;  %p161_p8 = scmp.ne.s32.totalorder %s114_s27, %s160_s1  ;;  %p166_p10 = scmp.lt.s32.totalorder %s160_s1, %s160_s1 }
  0x19   :  { %v56_v17 = vsel %vm34_vm0, %v40_v11, 0.0  ;;  %v51_v18 = vadd.f32 %v50_v16, %v49_v15  ;;  %v52_v19 = vsel %vm34_vm0, %v45_v13, 0.0  ;;  %v53_v20 = vsel %vm34_vm0, %v46_v14, 0.0 }
  0x1a   :  { %v57_v21 = vadd.f32 %v56_v17, %v55_v12  ;;  %v54_v22 = vadd.f32 %v53_v20, %v52_v19  ;;  %v87_v46 = vsub.s32 %v84_v44, %v86_v45  ;;  %p167_p11 = por %p166_p10, %p165_p9 }
  0x1b   :  { %v60_v23 = vsel %vm34_vm0, %v51_v18, 0.0 }
  0x1c   :  { %58 = vadd.xlane.f32.xlu0 %v57_v21  ;;  %v61_v24 = vsel %vm34_vm0, %v54_v22, 0.0  ;;  %p168_p12 = pnand %p167_p11, %p161_p8 }
  0x1d   :  { %v62_v25 = vadd.f32 %v61_v24, %v60_v23 }
  0x20   :  { %63 = vadd.xlane.f32.xlu0 %v62_v25 }
  0xa9   :  { %v59_v27 = vpop.xlane.xlu0 %58 }
  0xaa   :  { %v65_v28 = vmul.f32 0.001953125, %v59_v27 }
  0xac   :  { %v67_v30 = vmul.f32 %v65_v28, %v65_v28 }
  0xad   :  { %v64_v29 = vpop.xlane.xlu0 %63 }
  0xae   :  { %v66_v31 = vmul.f32 0.001953125, %v64_v29 }
  0xb0   :  { %v68_v32 = vsub.f32 %v66_v31, %v67_v30 }
  0xb2   :  { %v69_v33 = vmax.f32 %v68_v32, 0.0 }
  0xb4   :  { %v71_v34 = vadd.f32 1e-05, %v69_v33 }
  0xb6   :  { %136 = vrsqrt.f32 %v71_v34 }
  0xc0   :  { %v137_v36 = vpop.eup %136 }
  0xc1   :  { %v73_v37 = vmul.f32 %v137_v36, %v70_v35 }
  0xc3   :  { %80 = vperm.xlu1 %132, %v73_v37   ;;  %v76_v39 = vmul.f32 %v73_v37, %v65_v28 }
  0xc5   :  { %v77_v40 = vsub.f32 %v125_v38, %v76_v39 }
  0xc7   :  { %94 = vperm.xlu1 %132, %v77_v40  }
 0x142   :  { %v81_v47 = vpop.permute.xlu1 %80 }
 0x143   :  { %v88_v48 = vrot.slane %v81_v47, %v87_v46 }
 0x145   :  { %v90_v50 = vmul.f32 %v88_v48, %v26_v0  ;;  %v91_v51 = vmul.f32 %v88_v48, %v27_v1 }
 0x146   :  { %v95_v49 = vpop.permute.xlu1 %94 }
 0x147   :  { %v102_v52 = vrot.slane %v95_v49, %v87_v46 }
 0x149   :  { %v104_v53 = vadd.f32 %v102_v52, %v90_v50  ;;  %v105_v54 = vadd.f32 %v102_v52, %v91_v51 }
 0x14b   :  { %106 = vst [vmem:[#allocation5] sm:$0xff] %v104_v53  ;;  %107 = vst [vmem:[#allocation5 + $0x8] sm:$0xff] %v105_v54 }
 0x14c   :  { %171 = shalt.err (!%p168_p12)
}
 0x14d   :  { %s172_s30 = scalar_lea.hbm %s257_s2, 256 }
 0x14e   :  { %p173_p13 = scmp.ne.s32.totalorder %s257_s2, %s172_s30  ;;  %p176_p0 = scmp.lt.u32.totalorder %s172_s30, %s257_s2 }
 0x150   :  { %p178_p1 = pnand %p176_p0, %p173_p13 }
 0x152   :  { %181 = shalt.err (!%p178_p1)
}
 0x153   :  { %119 = dma.vmem_to_hbm [thread:$0]  %s114_s27, 256, %s257_s2, [#allocation4], %s187_s19, %s187_s19, %s188_s20  }
 0x154   :  { %184 = dma.done.wait [#allocation4], 256  }
 0x155   :  { %185 = vsyncadd [#allocation4], 4294967040 }
 0x156   :  { %123 = vsyncpa [#allocation3], 1 }
 0x157   :  { %124 = vsyncpa [#allocation4], 1 }

</bundles_post_ra>
